<compile_context>
chip_gen: v7x
topology: tpu7x:2x2x1
jax: 0.10.0
libtpu: 0.0.40
codegen_flags: <defaults>
</compile_context>

<pallas_src>
import jax
import jax.numpy as jnp
from jax.experimental import pallas as pl
from jax.experimental.pallas import tpu as pltpu

SEQ = 2  # fixed by the module's forward (for i in range(2))
_HIGHEST = jax.lax.Precision.HIGHEST


def _rnn_kernel(x_ref, wih_ref, whh_ref, b_ref, h0_ref, out_ref, hfin_ref):
    # x_ref   : (SEQ*B, I)   inputs for both timesteps (batch-major per step)
    # wih_ref : (I, H)       w_ih.T   (prepared once on host)
    # whh_ref : (H, H)       w_hh.T
    # b_ref   : (1, H)       b_ih + b_hh
    # h0_ref  : (B, H)       initial hidden state
    # out_ref : (SEQ, B, H)  stacked hidden states [h1, h2]
    # hfin_ref: (B, H)       final hidden state (== h2)
    B = h0_ref.shape[0]

    # Hoisted input projection: one MXU pass for all timesteps, bias folded in.
    xw = jnp.dot(
        x_ref[...], wih_ref[...],
        preferred_element_type=jnp.float32, precision=_HIGHEST,
    ) + b_ref[...]                                         # (SEQ*B, H)

    whh = whh_ref[...]                                     # (H, H)
    h = h0_ref[...]                                        # (B, H), lives in vregs

    hs = []
    for t in range(SEQ):                                   # static unroll
        acc = jnp.dot(h, whh,
                      preferred_element_type=jnp.float32, precision=_HIGHEST)
        h = jnp.tanh(xw[t * B:(t + 1) * B, :] + acc)
        hs.append(h)

    # Single packed store of both timesteps; (SEQ, B, H) is row-major
    # bit-identical to (SEQ*B, H) in HBM.
    out_ref[...] = jnp.stack(hs, axis=0).astype(out_ref.dtype)
    hfin_ref[...] = h.astype(hfin_ref.dtype)


def prepare_params(w_ih, w_hh, b_ih, b_hh):
    """One-time parameter preparation (module-construction time, not per call)."""
    return w_ih.T, w_hh.T, (b_ih + b_hh).reshape(1, -1)


def clean_basic_rnn_forward(X, h0, w_ih_t, w_hh_t, b):
    """Runs SEQ RNNCell steps.

    Returns (stacked hidden states of shape (SEQ, B, H), final hidden state),
    matching the PyTorch module's ([h1, h2], h2).
    """
    seq, B, I = X.shape
    H = h0.shape[1]
    assert seq == SEQ

    x2 = X.reshape(seq * B, I)  # contiguous reshape: pure bitcast

    vmem = pl.BlockSpec(memory_space=pltpu.MemorySpace.VMEM)
    out, h_final = pl.pallas_call(
        _rnn_kernel,
        out_shape=(
            jax.ShapeDtypeStruct((seq, B, H), jnp.float32),
            jax.ShapeDtypeStruct((B, H), jnp.float32),
        ),
        in_specs=[vmem, vmem, vmem, vmem, vmem],
        out_specs=(vmem, vmem),
    )(x2, w_ih_t, w_hh_t, b, h0)
    return out, h_final


def _reference_forward(X, h0, w_ih, w_hh, b_ih, b_hh):
    h = h0
    outs = []
    for i in range(SEQ):
        h = jnp.tanh(
            jnp.dot(X[i], w_ih.T, precision=_HIGHEST) + b_ih
            + jnp.dot(h, w_hh.T, precision=_HIGHEST) + b_hh
        )
        outs.append(h)
    return outs, h


if __name__ == "__main__":
    batch_size, n_inputs, n_neurons = 4, 16, 32

    key = jax.random.PRNGKey(0)
    kx, kh, k1, k2, k3, k4 = jax.random.split(key, 6)

    # Deterministic param init, mirroring nn.RNNCell's U(-1/sqrt(H), 1/sqrt(H)).
    bound = 1.0 / jnp.sqrt(jnp.float32(n_neurons))
    w_ih = jax.random.uniform(k1, (n_neurons, n_inputs), jnp.float32, -bound, bound)
    w_hh = jax.random.uniform(k2, (n_neurons, n_neurons), jnp.float32, -bound, bound)
    b_ih = jax.random.uniform(k3, (n_neurons,), jnp.float32, -bound, bound)
    b_hh = jax.random.uniform(k4, (n_neurons,), jnp.float32, -bound, bound)

    # hidden_state = torch.randn(batch_size, n_neurons)
    h0 = jax.random.normal(kh, (batch_size, n_neurons), jnp.float32)
    # Input X: (seq=2, batch, n_inputs)
    X = jax.random.normal(kx, (SEQ, batch_size, n_inputs), jnp.float32)

    # One-time parameter prep (transpose + bias fusion), outside the hot path.
    w_ih_t, w_hh_t, b = prepare_params(w_ih, w_hh, b_ih, b_hh)

    out, h_final = clean_basic_rnn_forward(X, h0, w_ih_t, w_hh_t, b)
    jax.block_until_ready((out, h_final))

    # Correctness check against a plain-JAX reference.
    ref_outputs, ref_h = _reference_forward(X, h0, w_ih, w_hh, b_ih, b_hh)
    for t in range(SEQ):
        assert jnp.allclose(out[t], ref_outputs[t], atol=1e-5, rtol=1e-5)
    assert jnp.allclose(h_final, ref_h, atol=1e-5, rtol=1e-5)

    print("KERNEL_OK")
</pallas_src>

<mosaic_0001>
module attributes {stable_mosaic.version = 11 : i64} {
  func.func @_rnn_kernel(%arg0: memref<8x16xf32, #tpu.memory_space<vmem>>, %arg1: memref<16x32xf32, #tpu.memory_space<vmem>>, %arg2: memref<32x32xf32, #tpu.memory_space<vmem>>, %arg3: memref<1x32xf32, #tpu.memory_space<vmem>>, %arg4: memref<4x32xf32, #tpu.memory_space<vmem>>, %arg5: memref<2x4x32xf32, #tpu.memory_space<vmem>>, %arg6: memref<4x32xf32, #tpu.memory_space<vmem>>) attributes {dimension_semantics = [], scalar_prefetch = 0 : i64, scratch_operands = 0 : i64, tpu.core_type = #tpu.core_type<tc>} {
    %c0 = arith.constant 0 : index
    %c0_0 = arith.constant 0 : index
    %0 = vector.load %arg0[%c0, %c0_0] : memref<8x16xf32, #tpu.memory_space<vmem>>, vector<8x16xf32>
    %c0_1 = arith.constant 0 : index
    %c0_2 = arith.constant 0 : index
    %1 = vector.load %arg1[%c0_1, %c0_2] : memref<16x32xf32, #tpu.memory_space<vmem>>, vector<16x32xf32>
    %cst = arith.constant dense<0.000000e+00> : vector<8x32xf32>
    %2 = tpu.matmul %0, %1, %cst {dimension_numbers = #tpu.dot_dimension_numbers<[1], [0], [0], [1], [0, 0, 1, 1], [], []>, precision = #tpu.contract_precision<fp32>} : vector<8x16xf32>, vector<16x32xf32>, vector<8x32xf32> -> vector<8x32xf32>
    %c0_3 = arith.constant 0 : index
    %c0_4 = arith.constant 0 : index
    %3 = vector.load %arg3[%c0_3, %c0_4] : memref<1x32xf32, #tpu.memory_space<vmem>>, vector<1x32xf32>
    %4 = vector.broadcast %3 : vector<1x32xf32> to vector<8x32xf32>
    %5 = arith.addf %2, %4 : vector<8x32xf32>
    %c0_5 = arith.constant 0 : index
    %c0_6 = arith.constant 0 : index
    %6 = vector.load %arg2[%c0_5, %c0_6] : memref<32x32xf32, #tpu.memory_space<vmem>>, vector<32x32xf32>
    %c0_7 = arith.constant 0 : index
    %c0_8 = arith.constant 0 : index
    %7 = vector.load %arg4[%c0_7, %c0_8] : memref<4x32xf32, #tpu.memory_space<vmem>>, vector<4x32xf32>
    %cst_9 = arith.constant dense<0.000000e+00> : vector<4x32xf32>
    %8 = tpu.matmul %7, %6, %cst_9 {dimension_numbers = #tpu.dot_dimension_numbers<[1], [0], [0], [1], [0, 0, 1, 1], [], []>, precision = #tpu.contract_precision<fp32>} : vector<4x32xf32>, vector<32x32xf32>, vector<4x32xf32> -> vector<4x32xf32>
    %9 = vector.extract_strided_slice %5 {offsets = [0, 0], sizes = [4, 32], strides = [1, 1]} : vector<8x32xf32> to vector<4x32xf32>
    %10 = arith.addf %9, %8 : vector<4x32xf32>
    %11 = math.tanh %10 : vector<4x32xf32>
    %cst_10 = arith.constant dense<0.000000e+00> : vector<4x32xf32>
    %12 = tpu.matmul %11, %6, %cst_10 {dimension_numbers = #tpu.dot_dimension_numbers<[1], [0], [0], [1], [0, 0, 1, 1], [], []>, precision = #tpu.contract_precision<fp32>} : vector<4x32xf32>, vector<32x32xf32>, vector<4x32xf32> -> vector<4x32xf32>
    %13 = vector.extract_strided_slice %5 {offsets = [4, 0], sizes = [4, 32], strides = [1, 1]} : vector<8x32xf32> to vector<4x32xf32>
    %14 = arith.addf %13, %12 : vector<4x32xf32>
    %15 = math.tanh %14 : vector<4x32xf32>
    %16 = vector.shape_cast %11 : vector<4x32xf32> to vector<1x4x32xf32>
    %17 = vector.shape_cast %15 : vector<4x32xf32> to vector<1x4x32xf32>
    %18 = tpu.concatenate %16, %17 in 0 : vector<1x4x32xf32>, vector<1x4x32xf32> -> vector<2x4x32xf32>
    %c0_11 = arith.constant 0 : index
    %c0_12 = arith.constant 0 : index
    %c0_13 = arith.constant 0 : index
    %19 = vector.load %arg5[%c0_11, %c0_12, %c0_13] : memref<2x4x32xf32, #tpu.memory_space<vmem>>, vector<2x4x32xf32>
    tpu.vector_store %arg5[%c0_11, %c0_12, %c0_13], %18 {strides = array<i32>} : memref<2x4x32xf32, #tpu.memory_space<vmem>>, vector<2x4x32xf32>,
    %c0_14 = arith.constant 0 : index
    %c0_15 = arith.constant 0 : index
    %20 = vector.load %arg6[%c0_14, %c0_15] : memref<4x32xf32, #tpu.memory_space<vmem>>, vector<4x32xf32>
    tpu.vector_store %arg6[%c0_14, %c0_15], %15 {strides = array<i32>} : memref<4x32xf32, #tpu.memory_space<vmem>>, vector<4x32xf32>,
    return
  }
}

</mosaic_0001>

<bundles_post_ra>
// kernel: tpu_custom_call.1
= control target key start
LH: loop header
LB: loop body
LE: loop exit
PB: predicated region body
PF: predicated region fallthrough
CT: control target
= control target key end

     0   :  { %12 = vsyncpa [#allocation3], 0  ;;  %s2328_s0 = inlined_call_operand.hbm [shape: f32[8,16], index: 0, kind: input, shape index: {}]   ;;  %s2329_s1 = inlined_call_operand.hbm [shape: f32[16,32], index: 1, kind: input, shape index: {}]   ;;  %s2330_s2 = inlined_call_operand.hbm [shape: f32[32,32], index: 2, kind: input, shape index: {}]   ;;  %s2331_s3 = inlined_call_operand.vmem [shape: f32[1,32], index: 3, kind: input, shape index: {}]   ;;  %s2332_s4 = inlined_call_operand.vmem [shape: f32[4,32], index: 4, kind: input, shape index: {}]   ;;  %s2333_s5 = inlined_call_operand.hbm [shape: f32[2,4,32], index: 5, kind: output, shape index: {0}]   ;;  %s2334_s6 = inlined_call_operand.hbm [shape: f32[4,32], index: 6, kind: output, shape index: {1}]  }
   0x1   :  { %13 = vsyncpa [#allocation6], 0 }
   0x2   :  { %14 = vsyncpa [#allocation4], 0 }
   0x3   :  { %15 = vsyncpa [#allocation10], 0  ;;  %s2063_s21 = smov [#allocation5]   ;;  %s1945_s25 = scalar_lea.hbm %s2329_s1, 256 }
   0x4   :  { %s31_s22 = sshll.u32 %s2063_s21, 4  ;;  %p1946_p0 = scmp.ne.s32.totalorder %s2329_s1, %s1945_s25  ;;  %s32_s22 = int_to_ptr.vmem [resolvable:$true] %s31_s22 }
   0x5   :  { %p1949_p1 = scmp.lt.u32.totalorder %s1945_s25, %s2329_s1 }
   0x7   :  { %p1951_p2 = pnand %p1949_p1, %p1946_p0 }
   0x9   :  { %1954 = shalt.err (!%p1951_p2)
}
   0xa   :  { %s1955_s30 = scalar_lea.vmem %s32_s22, 256  ;;  %p1960_p4 = scmp.lt.s32.totalorder %s32_s22, %s32_s22 }
   0xb   :  { %p1956_p3 = scmp.ne.s32.totalorder %s32_s22, %s1955_s30  ;;  %p1961_p5 = scmp.lt.s32.totalorder %s1955_s30, %s1955_s30 }
   0xd   :  { %p1962_p6 = por %p1961_p5, %p1960_p4 }
   0xf   :  { %p1963_p7 = pnand %p1962_p6, %p1956_p3 }
  0x11   :  { %1966 = shalt.err (!%p1963_p7)
}
  0x12   :  { %s2064_s7 = smov 128   ;;  %s2065_s8 = smov 8  }
  0x13   :  { %37 = dma.hbm_to_vmem [thread:$0]  %s2329_s1, 256, %s32_s22, [#allocation6], %s2064_s7, %s2064_s7, %s2065_s8  }
  0x14   :  { %s2066_s11 = smov [#allocation2]   ;;  %s2067_s13 = smov [#allocation7]  }
  0x15   :  { %s22_s12 = sshll.u32 %s2066_s11, 4  ;;  %s43_s14 = sshll.u32 %s2067_s13, 4  ;;  %s23_s12 = int_to_ptr.vmem [resolvable:$true] %s22_s12  ;;  %s44_s14 = int_to_ptr.vmem [resolvable:$true] %s43_s14 }
  0x16   :  { %s1967_s17 = scalar_lea.hbm %s2328_s0, 128 }
  0x17   :  { %p1968_p8 = scmp.ne.s32.totalorder %s2328_s0, %s1967_s17  ;;  %p1971_p9 = scmp.lt.u32.totalorder %s1967_s17, %s2328_s0 }
  0x19   :  { %p1973_p10 = pnand %p1971_p9, %p1968_p8 }
  0x1b   :  { %1976 = shalt.err (!%p1973_p10)
}
  0x1c   :  { %s1977_s1 = scalar_lea.vmem %s23_s12, 128  ;;  %p1982_p12 = scmp.lt.s32.totalorder %s23_s12, %s23_s12 }
  0x1d   :  { %p1978_p11 = scmp.ne.s32.totalorder %s23_s12, %s1977_s1  ;;  %p1983_p13 = scmp.lt.s32.totalorder %s1977_s1, %s1977_s1 }
  0x1f   :  { %p1984_p0 = por %p1983_p13, %p1982_p12 }
  0x21   :  { %p1985_p1 = pnand %p1984_p0, %p1978_p11 }
  0x23   :  { %1988 = shalt.err (!%p1985_p1)
}
  0x24   :  { %25 = dma.hbm_to_vmem [thread:$0]  %s2328_s0, 128, %s23_s12, [#allocation3]  }
  0x25   :  { %s1989_s26 = scalar_lea.hbm %s2330_s2, 512 }
  0x26   :  { %p1990_p2 = scmp.ne.s32.totalorder %s2330_s2, %s1989_s26  ;;  %p1993_p3 = scmp.lt.u32.totalorder %s1989_s26, %s2330_s2 }
  0x28   :  { %p1995_p4 = pnand %p1993_p3, %p1990_p2 }
  0x2a   :  { %1998 = shalt.err (!%p1995_p4)
}
  0x2b   :  { %s1999_s9 = scalar_lea.vmem %s44_s14, 512  ;;  %p2004_p6 = scmp.lt.s32.totalorder %s44_s14, %s44_s14 }
  0x2c   :  { %p2000_p5 = scmp.ne.s32.totalorder %s44_s14, %s1999_s9  ;;  %p2005_p7 = scmp.lt.s32.totalorder %s1999_s9, %s1999_s9 }
  0x2e   :  { %p2006_p8 = por %p2005_p7, %p2004_p6 }
  0x30   :  { %p2007_p9 = pnand %p2006_p8, %p2000_p5 }
  0x32   :  { %2010 = shalt.err (!%p2007_p9)
}
  0x33   :  { %49 = dma.hbm_to_vmem [thread:$0]  %s2330_s2, 512, %s44_s14, [#allocation6], %s2064_s7, %s2064_s7, %s2065_s8  }
  0x34   :  { %2055 = dma.done.wait [#allocation3], 128  }
  0x35   :  { %2056 = vsyncadd [#allocation3], 4294967168 }
  0x36   :  { %2057 = dma.done.wait [#allocation6], 768  }
  0x37   :  { %2058 = vsyncadd [#allocation6], 4294966528  ;;  %v2068_v0 = vmov 0.0|0.0   ;;  %vm2069_vm0 = vmmov 0   ;;  %v2070_v1 = vmov 0.0   ;;  %vm73_vm1 = vcmask 130048  }
  0x38   :  { %1818 = vmatprep.subr.bf16.mxu0 %v2068_v0  ;;  %1648 = vmatprep.mubr.msk.f32.mxu0 %vm2069_vm0, %v2070_v1  ;;  %v64_v2 = vld [vmem:[#allocation5] sm:$0xff]  ;;  %v65_v3 = vld [vmem:[#allocation5 + $0x8] sm:$0xff]  ;;  %v63_v4 = vld [vmem:[#allocation2] sm:$0xff]  ;;  %vm541_vm2 = vcmask 261120   ;;  %vm1528_vm3 = vcmask 257024   ;;  %s2072_s12 = smov [#allocation8]  }
  0x39   :  { %1848 = vmatprep.subr.bf16.mxu1 %v2068_v0  ;;  %1716 = vmatprep.mubr.msk.f32.mxu1 %vm2069_vm0, %v2070_v1  ;;  %v78_v5 = vand.u32 4294901760, %v64_v2  ;;  %v81_v6 = vand.u32 4294901760, %v65_v3  ;;  %v75_v7 = vsel %vm73_vm1, %v63_v4, 0  ;;  %v536_v8 = vld [vmem:[#allocation7] sm:$0xff]  ;;  %v537_v9 = vld [vmem:[#allocation7 + $0x8] sm:$0xff]  ;;  %v538_v16 = vld [vmem:[#allocation7 + $0x10] sm:$0xff] }
  0x3a   :  { %v2158_v10 = vand.u32 4294901760, %v75_v7  ;;  %v546_v11 = vand.u32 4294901760, %v536_v8  ;;  %v549_v15 = vand.u32 4294901760, %v537_v9  ;;  %v539_v17 = vld [vmem:[#allocation7 + $0x18] sm:$0xff]  ;;  %v552_v22 = vand.u32 4294901760, %v538_v16  ;;  %s1538_s13 = sshll.u32 %s2072_s12, 4  ;;  %s2296_s13 = int_to_ptr.vmem [resolvable:$true] %s1538_s13 }
  0x3b   :  { %v2160_v12 = vpack.c.bf16 %v81_v6, %v78_v5  ;;  %v2162_v13 = vsub.f32 %v64_v2, %v78_v5  ;;  %v2164_v14 = vsub.f32 %v65_v3, %v81_v6  ;;  %v555_v23 = vand.u32 4294901760, %v539_v17  ;;  %v540_v24 = vld [vmem:[%s2332_s4] sm:$0xf] }
  0x3c   :  { %v2167_v18 = vsub.f32 %v75_v7, %v2158_v10  ;;  %v626_v27 = vsub.f32 %v536_v8, %v546_v11  ;;  %v633_v28 = vsub.f32 %v537_v9, %v549_v15  ;;  %v543_v32 = vsel %vm541_vm2, %v540_v24, 0 }
  0x3d   :  { %1820 = vmatpush3.bf16.msra.mxu0 %v2160_v12  ;;  %v157_v19 = vand.u32 4294901760, %v2162_v13  ;;  %v164_v20 = vand.u32 4294901760, %v2164_v14  ;;  %v640_v36 = vsub.f32 %v538_v16, %v552_v22  ;;  %v647_v37 = vsub.f32 %v539_v17, %v555_v23 }
  0x3e   :  { %v146_v21 = vand.u32 4294901760, %v2167_v18  ;;  %1821 = vmatprep.subr.bf16.mxu0 %v2068_v0  ;;  %v2181_v33 = vpack.c.bf16 %v633_v28, %v626_v27  ;;  %v2184_v38 = vand.u32 4294901760, %v543_v32  ;;  %v627_v39 = vand.u32 4294901760, %v626_v27 }
  0x3f   :  { %v158_v25 = vsub.f32 %v2162_v13, %v157_v19  ;;  %v165_v26 = vsub.f32 %v2164_v14, %v164_v20  ;;  %v634_v40 = vand.u32 4294901760, %v633_v28  ;;  %v2189_v41 = vpack.c.bf16 %v647_v37, %v640_v36 }
  0x40   :  { %v147_v29 = vsub.f32 %v2167_v18, %v146_v21  ;;  %1850 = vmatpush3.bf16.msra.mxu1 %v2181_v33  ;;  %v2196_v43 = vsub.f32 %v543_v32, %v2184_v38  ;;  %v1825_v44 = vpack.c.bf16 %v2164_v14, %v2162_v13  ;;  %v641_v45 = vand.u32 4294901760, %v640_v36 }
  0x41   :  { %v159_v30 = vand.u32 4294901760, %v158_v25  ;;  %v166_v31 = vand.u32 4294901760, %v165_v26  ;;  %1851 = vmatprep.subr.bf16.mxu1 %v2068_v0  ;;  %v2193_v42 = vpack.c.bf16 %v634_v40, %v627_v39  ;;  %v648_v46 = vand.u32 4294901760, %v647_v37 }
  0x42   :  { %v148_v34 = vand.u32 4294901760, %v147_v29  ;;  %v2214_v48 = vpack.c.bf16 %v549_v15, %v546_v11  ;;  %v2225_v49 = vpack.c.bf16 %v555_v23, %v552_v22  ;;  %v1831_v50 = vpack.c.bf16 %v164_v20, %v157_v19 }
  0x43   :  { %v1822_v35 = vpack.c.bf16 %v166_v31, %v159_v30  ;;  %v2203_v47 = vpack.c.bf16 %v648_v46, %v641_v45  ;;  %v616_v51 = vand.u32 4294901760, %v2196_v43  ;;  %v628_v52 = vsub.f32 %v626_v27, %v627_v39 }
  0x44   :  { %1649 = vmatmul.mubr.f32.vlgmr.msra.gmra.mrb[0].mxu0 %v148_v34  ;;  %1853 = vmatpush3.bf16.msra.mxu1 %v2189_v41  ;;  %v635_v53 = vsub.f32 %v633_v28, %v634_v40  ;;  %v642_v57 = vsub.f32 %v640_v36, %v641_v45  ;;  %v649_v58 = vsub.f32 %v647_v37, %v648_v46  ;;  %vm1531_vm4 = vcmask 261124  }
  0x45   :  { %1823 = vmatpush3.bf16.msra.mxu0 %v1822_v35  ;;  %1655 = vmatprep.mubr.msk.f32.mxu0 %vm2069_vm0, %v2070_v1  ;;  %v617_v54 = vsub.f32 %v2196_v43, %v616_v51  ;;  %v629_v55 = vand.u32 4294901760, %v628_v52 }
  0x46   :  { %1824 = vmatprep.subr.bf16.mxu0 %v2068_v0  ;;  %1860 = vmatprep.subr.bf16.mxu1 %v2068_v0  ;;  %v636_v56 = vand.u32 4294901760, %v635_v53  ;;  %v643_v61 = vand.u32 4294901760, %v642_v57  ;;  %v650_v62 = vand.u32 4294901760, %v649_v58 }
  0x47   :  { %1717 = vmatmul.mubr.f32.vlgmr.msra.gmra.mrb[0].mxu1 %v2196_v43  ;;  %v618_v59 = vand.u32 4294901760, %v617_v54 }
  0x48   :  { %1862 = vmatpush3.bf16.msra.mxu1 %v2193_v42  ;;  %1738 = vmatprep.mubr.msk.f32.mxu1 %vm2069_vm0, %v2070_v1  ;;  %v1843_v60 = vpack.c.bf16 %v636_v56, %v629_v55  ;;  %v1846_v63 = vpack.c.bf16 %v650_v62, %v643_v61 }
  0x49   :  { %1863 = vmatprep.subr.bf16.mxu1 %v2068_v0 }
  0x4c   :  { %1656 = vmatmul.mubr.f32.vlgmr.msra.gmra.mrb[0].mxu0 %v2158_v10  ;;  %1865 = vmatpush3.bf16.msra.mxu1 %v2203_v47 }
  0x4d   :  { %1826 = vmatpush3.bf16.msra.mxu0 %v1825_v44  ;;  %1662 = vmatprep.mubr.msk.f32.mxu0 %vm2069_vm0, %v2070_v1 }
  0x4e   :  { %1827 = vmatprep.subr.bf16.mxu0 %v2068_v0  ;;  %1872 = vmatprep.subr.bf16.mxu1 %v2068_v0 }
  0x4f   :  { %1739 = vmatmul.mubr.f32.vlgmr.msra.gmra.mrb[2].mxu1 %v2184_v38 }
  0x50   :  { %1874 = vmatpush3.bf16.msra.mxu1 %v2214_v48  ;;  %1760 = vmatprep.mubr.msk.f32.mxu1 %vm2069_vm0, %v2070_v1 }
  0x51   :  { %1875 = vmatprep.subr.bf16.mxu1 %v2068_v0 }
  0x54   :  { %1663 = vmatmul.mubr.f32.vlgmr.msra.gmra.mrb[0].mxu0 %v2167_v18  ;;  %1877 = vmatpush3.bf16.msra.mxu1 %v2225_v49  ;;  %v1565_v18 = vld [vmem:[%s2331_s3] ss:$0 sm:$0xff]  ;;  %s2071_s3 = smov [#allocation9]  }
  0x55   :  { %1829 = vmatpush3.bf16.msra.mxu0 %v2160_v12  ;;  %1669 = vmatprep.mubr.msk.f32.mxu0 %vm2069_vm0, %v2070_v1  ;;  %s1551_s11 = sshll.u32 %s2071_s3, 4  ;;  %s1552_s11 = int_to_ptr.vmem [resolvable:$true] %s1551_s11 }
  0x56   :  { %1830 = vmatprep.subr.bf16.mxu0 %v2068_v0  ;;  %1878 = vmatprep.subr.bf16.mxu1 %v2068_v0  ;;  %s2011_s14 = scalar_lea.vmem %s1552_s11, 64  ;;  %p2016_p11 = scmp.lt.s32.totalorder %s1552_s11, %s1552_s11 }
  0x57   :  { %p2012_p10 = scmp.ne.s32.totalorder %s1552_s11, %s2011_s14  ;;  %p2017_p12 = scmp.lt.s32.totalorder %s2011_s14, %s2011_s14 }
  0x59   :  { %p2018_p13 = por %p2017_p12, %p2016_p11 }
  0x5b   :  { %p2019_p0 = pnand %p2018_p13, %p2012_p10 }
  0x5c   :  { %1670 = vmatmul.mubr.f32.vlgmr.msra.gmra.mrb[0].mxu0 %v146_v21 }
  0x5d   :  { %1832 = vmatpush3.bf16.msra.mxu0 %v1831_v50  ;;  %1676 = vmatprep.mubr.msk.f32.mxu0 %vm2069_vm0, %v2070_v1 }
  0x5e   :  { %1833 = vmatprep.subr.bf16.mxu0 %v2068_v0 }
  0x64   :  { %1677 = vmatmul.mubr.f32.vlgmr.msra.gmra.mrb[0].mxu0 %v2158_v10 }
  0x65   :  { %1835 = vmatpush3.bf16.msra.mxu0 %v2160_v12  ;;  %1683 = vmatprep.mubr.msk.f32.mxu0 %vm2069_vm0, %v2070_v1 }
  0x66   :  { %1836 = vmatprep.subr.bf16.mxu0 %v2068_v0 }
  0x6c   :  { %1684 = vmatmul.mubr.f32.vlgmr.msra.gmra.mrb[0].mxu0 %v2158_v10 }
  0x6d   :  { %1838 = vmatpush3.bf16.msra.mxu0 %v2214_v48  ;;  %1694 = vmatprep.mubr.msk.f32.mxu0 %vm2069_vm0, %v2070_v1 }
  0x6e   :  { %1839 = vmatprep.subr.bf16.mxu0 %v2068_v0 }
  0x71   :  { %1841 = vmatpush3.bf16.msra.mxu0 %v2225_v49 }
  0x72   :  { %1842 = vmatprep.subr.bf16.mxu0 %v2068_v0 }
  0x74   :  { %1695 = vmatmul.mubr.f32.vlgmr.msra.gmra.mrb[2].mxu0 %v618_v59 }
  0x75   :  { %1844 = vmatpush3.bf16.msra.mxu0 %v1843_v60  ;;  %1705 = vmatprep.mubr.msk.f32.mxu0 %vm2069_vm0, %v2070_v1 }
  0x76   :  { %1845 = vmatprep.subr.bf16.mxu0 %v2068_v0 }
  0x79   :  { %1847 = vmatpush3.bf16.msra.mxu0 %v1846_v63 }
  0x7a   :  { %1854 = vmatprep.subr.bf16.mxu0 %v2068_v0 }
  0x7c   :  { %1706 = vmatmul.mubr.f32.vlgmr.msra.gmra.mrb[4].mxu0 %v2184_v38 }
  0x7d   :  { %1856 = vmatpush3.bf16.msra.mxu0 %v2214_v48  ;;  %1727 = vmatprep.mubr.msk.f32.mxu0 %vm2069_vm0, %v2070_v1 }
  0x7e   :  { %1857 = vmatprep.subr.bf16.mxu0 %v2068_v0 }
  0x81   :  { %1859 = vmatpush3.bf16.msra.mxu0 %v2225_v49 }
  0x82   :  { %1866 = vmatprep.subr.bf16.mxu0 %v2068_v0 }
  0x84   :  { %1728 = vmatmul.mubr.f32.vlgmr.msra.gmra.mrb[6].mxu0 %v616_v51 }
  0x85   :  { %1868 = vmatpush3.bf16.msra.mxu0 %v2214_v48  ;;  %1749 = vmatprep.mubr.msk.f32.mxu0 %vm2069_vm0, %v2070_v1 }
  0x86   :  { %1869 = vmatprep.subr.bf16.mxu0 %v2068_v0 }
  0x89   :  { %1871 = vmatpush3.bf16.msra.mxu0 %v2225_v49 }
  0x8c   :  { %1750 = vmatmul.mubr.f32.vlgmr.msra.gmra.mrb[8].mxu0 %v2184_v38 }
 0x11a   :  { %v791_v2 = vpop.f32.mrb[0].mxu1 }
 0x11b   :  { %v1718_v3 = vpop.f32.mrb[1].mxu1 }
 0x122   :  { %v951_v4 = vpop.f32.mrb[2].mxu1 }
 0x123   :  { %v1740_v5 = vpop.f32.mrb[3].mxu1 }
 0x13f   :  { %v532_v6 = vpop.f32.mrb[0].mxu0 }
 0x140   :  { %v1685_v7 = vpop.f32.mrb[1].mxu0  ;;  %v1908_v20 = vadd.f32 %v1565_v18, %v532_v6 }
 0x147   :  { %v620_v8 = vpop.f32.mrb[2].mxu0 }
 0x148   :  { %v1696_v9 = vpop.f32.mrb[3].mxu0 }
 0x14f   :  { %v711_v10 = vpop.f32.mrb[4].mxu0 }
 0x150   :  { %v712_v11 = vadd.f32 %v711_v10, %v620_v8  ;;  %v1707_v12 = vpop.f32.mrb[5].mxu0 }
 0x152   :  { %v792_v13 = vadd.f32 %v791_v2, %v712_v11 }
 0x157   :  { %v868_v14 = vpop.f32.mrb[6].mxu0 }
 0x158   :  { %v869_v15 = vadd.f32 %v868_v14, %v792_v13  ;;  %v1729_v16 = vpop.f32.mrb[7].mxu0 }
 0x15a   :  { %v952_v17 = vadd.f32 %v951_v4, %v869_v15 }
 0x15f   :  { %v1026_v19 = vpop.f32.mrb[8].mxu0 }
 0x160   :  { %v1027_v21 = vadd.f32 %v1026_v19, %v952_v17  ;;  %v1751_v22 = vpop.f32.mrb[9].mxu0 }
 0x162   :  { %v1030_v23 = vadd.f32 %v1908_v20, %v1027_v21 }
 0x164   :  { %1941 = vtanh.f32 %v1030_v23 }
 0x16e   :  { %v1942_v24 = vpop.eup %1941 }
 0x16f   :  { %v1033_v25 = vsel %vm541_vm2, %v1942_v24, 0  ;;  %1529 = vst.msk [vmem:[#allocation8] sm:$0xf] %vm1528_vm3, %v1942_v24 }
 0x170   :  { %v1104_v26 = vand.u32 4294901760, %v1033_v25 }
 0x172   :  { %v1105_v27 = vsub.f32 %v1033_v25, %v1104_v26 }
 0x174   :  { %v1106_v28 = vand.u32 4294901760, %v1105_v27 }
 0x176   :  { %v1107_v29 = vsub.f32 %v1105_v27, %v1106_v28 }
 0x178   :  { %v1108_v30 = vand.u32 4294901760, %v1107_v29 }
 0x17a   :  { %1761 = vmatmul.mubr.f32.vlgmr.msra.gmra.mrb[4].mxu1 %v1108_v30 }
 0x17b   :  { %1880 = vmatpush3.bf16.msra.mxu1 %v1843_v60  ;;  %1771 = vmatprep.mubr.msk.f32.mxu1 %vm2069_vm0, %v2070_v1 }
 0x17c   :  { %1881 = vmatprep.subr.bf16.mxu1 %v2068_v0 }
 0x17f   :  { %1883 = vmatpush3.bf16.msra.mxu1 %v1846_v63 }
 0x180   :  { %1884 = vmatprep.subr.bf16.mxu1 %v2068_v0 }
 0x182   :  { %1772 = vmatmul.mubr.f32.vlgmr.msra.gmra.mrb[4].mxu1 %v1104_v26 }
 0x183   :  { %1886 = vmatpush3.bf16.msra.mxu1 %v2181_v33  ;;  %1782 = vmatprep.mubr.msk.f32.mxu1 %vm2069_vm0, %v2070_v1 }
 0x184   :  { %1887 = vmatprep.subr.bf16.mxu1 %v2068_v0 }
 0x187   :  { %1889 = vmatpush3.bf16.msra.mxu1 %v2189_v41 }
 0x188   :  { %1890 = vmatprep.subr.bf16.mxu1 %v2068_v0 }
 0x18a   :  { %1783 = vmatmul.mubr.f32.vlgmr.msra.gmra.mrb[4].mxu1 %v1105_v27 }
 0x18b   :  { %1892 = vmatpush3.bf16.msra.mxu1 %v2214_v48  ;;  %1793 = vmatprep.mubr.msk.f32.mxu1 %vm2069_vm0, %v2070_v1 }
 0x18c   :  { %1893 = vmatprep.subr.bf16.mxu1 %v2068_v0 }
 0x18f   :  { %1895 = vmatpush3.bf16.msra.mxu1 %v2225_v49 }
 0x190   :  { %1896 = vmatprep.subr.bf16.mxu1 %v2068_v0 }
 0x192   :  { %1794 = vmatmul.mubr.f32.vlgmr.msra.gmra.mrb[4].mxu1 %v1106_v28 }
 0x193   :  { %1898 = vmatpush3.bf16.msra.mxu1 %v2193_v42  ;;  %1804 = vmatprep.mubr.msk.f32.mxu1 %vm2069_vm0, %v2070_v1 }
 0x194   :  { %1899 = vmatprep.subr.bf16.mxu1 %v2068_v0 }
 0x197   :  { %1901 = vmatpush3.bf16.msra.mxu1 %v2203_v47 }
 0x198   :  { %1902 = vmatprep.subr.bf16.mxu1 %v2068_v0 }
 0x19a   :  { %1805 = vmatmul.mubr.f32.vlgmr.msra.gmra.mrb[4].mxu1 %v1104_v26 }
 0x19b   :  { %1904 = vmatpush3.bf16.msra.mxu1 %v2214_v48  ;;  %1815 = vmatprep.mubr.msk.f32.mxu1 %vm2069_vm0, %v2070_v1 }
 0x19c   :  { %1905 = vmatprep.subr.bf16.mxu1 %v2068_v0 }
 0x19f   :  { %1907 = vmatpush3.bf16.msra.mxu1 %v2225_v49 }
 0x1a2   :  { %1816 = vmatmul.mubr.f32.vlgmr.msra.gmra.mrb[4].mxu1 %v1104_v26 }
 0x275   :  { %v1516_v31 = vpop.f32.mrb[4].mxu1 }
 0x276   :  { %v1521_v32 = vrot.slane %v1516_v31, 4  ;;  %v1817_v33 = vpop.f32.mrb[5].mxu1 }
 0x278   :  { %v1523_v34 = vadd.f32 %v1908_v20, %v1521_v32 }
 0x27a   :  { %1943 = vtanh.f32 %v1523_v34 }
 0x284   :  { %v1944_v35 = vpop.eup %1943 }
 0x285   :  { %v1526_v1 = vrot.slane %v1944_v35, 4  ;;  %1532 = vst.msk [vmem:[#allocation9 - $0x4] sm:$0xf0] %vm1531_vm4, %v1944_v35 }
 0x286   :  { %2022 = shalt.err (!%p2019_p0)
}
 0x287   :  { %s2023_s17 = scalar_lea.hbm %s2334_s6, 64 }
 0x288   :  { %p2024_p1 = scmp.ne.s32.totalorder %s2334_s6, %s2023_s17  ;;  %p2027_p2 = scmp.lt.u32.totalorder %s2023_s17, %s2334_s6 }
 0x28a   :  { %p2029_p3 = pnand %p2027_p2, %p2024_p1 }
 0x28c   :  { %2032 = shalt.err (!%p2029_p3)
}
 0x28d   :  { %1554 = dma.vmem_to_hbm [thread:$0]  %s1552_s11, 64, %s2334_s6, [#allocation10]   ;;  %1530 = vst.msk [vmem:[#allocation8 + $0x4] sm:$0xf] %vm1528_vm3, %v1526_v1 }
 0x28e   :  { %s2033_s23 = scalar_lea.vmem %s2296_s13, 128  ;;  %p2038_p5 = scmp.lt.s32.totalorder %s2296_s13, %s2296_s13 }
 0x28f   :  { %p2034_p4 = scmp.ne.s32.totalorder %s2296_s13, %s2033_s23  ;;  %p2039_p6 = scmp.lt.s32.totalorder %s2033_s23, %s2033_s23 }
 0x291   :  { %p2040_p7 = por %p2039_p6, %p2038_p5 }
 0x293   :  { %p2041_p8 = pnand %p2040_p7, %p2034_p4 }
 0x295   :  { %2044 = shalt.err (!%p2041_p8)
}
 0x296   :  { %s2045_s26 = scalar_lea.hbm %s2333_s5, 128 }
 0x297   :  { %p2046_p9 = scmp.ne.s32.totalorder %s2333_s5, %s2045_s26  ;;  %p2049_p10 = scmp.lt.u32.totalorder %s2045_s26, %s2333_s5 }
 0x299   :  { %p2051_p11 = pnand %p2049_p10, %p2046_p9 }
 0x29b   :  { %2054 = shalt.err (!%p2051_p11)
}
 0x29c   :  { %s2073_s30 = smov 64   ;;  %s2074_s9 = smov 4  }
 0x29d   :  { %1544 = dma.vmem_to_hbm [thread:$0]  %s2296_s13, 128, %s2333_s5, [#allocation4], %s2073_s30, %s2073_s30, %s2074_s9  }
 0x29e   :  { %2059 = dma.done.wait [#allocation4], 128  }
 0x29f   :  { %2060 = vsyncadd [#allocation4], 4294967168 }
 0x2a0   :  { %2061 = dma.done.wait [#allocation10], 64  }
 0x2a1   :  { %2062 = vsyncadd [#allocation10], 4294967232 }
 0x2a2   :  { %1561 = vsyncpa [#allocation3], 1 }
 0x2a3   :  { %1562 = vsyncpa [#allocation6], 1 }
 0x2a4   :  { %1563 = vsyncpa [#allocation4], 1 }
 0x2a5   :  { %1564 = vsyncpa [#allocation10], 1 }

</bundles_post_ra>
